<compile_context>
chip_gen: v7x
topology: tpu7x:2x2x1
jax: 0.10.0
libtpu: 0.0.40
codegen_flags: <defaults>
</compile_context>

<pallas_src>
import jax
import jax.numpy as jnp
import numpy as np
from jax.experimental import pallas as pl
from jax.experimental.pallas import tpu as pltpu

MAX_TILE = 4096  # pixels per lane tile


def _round_up(a, m):
    return (a + m - 1) // m * m


# ------------------------- kernel: augmented Gram -------------------------- #
def _gram_kernel(x_ref, p_ref, m_ref):
    """Accumulate M += A A^T with A = [x; p; 1] over one pixel tile."""
    @pl.when(pl.program_id(2) == 0)
    def _():
        m_ref[...] = jnp.zeros_like(m_ref)

    x = x_ref[0]                                   # (C, T)
    p = p_ref[0]                                   # (1, T)
    ones = jnp.ones_like(p)                        # (1, T)
    a = jnp.concatenate([x, p, ones], axis=0)      # (C+2, T)
    # One MXU "NT" matmul yields G, v, Σx, Σp, Σp² simultaneously.
    m_ref[0, 0] += jax.lax.dot_general(
        a, a, (((1,), (1,)), ((), ())), preferred_element_type=jnp.float32)


def _gram(x, p, *, tile, n_shards):
    B, C, HW_pad = x.shape
    tps = HW_pad // (tile * n_shards)              # pixel tiles per shard
    grid = (n_shards, B, tps)                      # reduction axis innermost

    def x_map(s, b, t):
        return (b, 0, s * tps + t)

    def p_map(s, b, t):
        return (b, 0, s * tps + t)

    def m_map(s, b, t):
        return (s, b, 0, 0)

    return pl.pallas_call(
        _gram_kernel,
        out_shape=jax.ShapeDtypeStruct((n_shards, B, C + 2, C + 2),
                                       jnp.float32),
        grid=grid,
        in_specs=[pl.BlockSpec((1, C, tile), x_map),
                  pl.BlockSpec((1, 1, tile), p_map)],
        out_specs=pl.BlockSpec((1, 1, C + 2, C + 2), m_map),
        compiler_params=pltpu.CompilerParams(
            dimension_semantics=("parallel", "parallel", "arbitrary")),
    )(x, p)


# --------------------------------- wrapper --------------------------------- #
def lsr(outputs, pan):
    """Pallas LSR.forward.  outputs: (B, C, H, W), pan: (B, 1, H, W) -> (B,)."""
    B, C, H, W = outputs.shape
    assert pan.shape == (B, 1, H, W)
    HW = H * W

    # Stream bf16 straight through (MXU-native); everything else as f32.
    dt = outputs.dtype
    if dt not in (jnp.bfloat16, jnp.float32):
        dt = jnp.float32
    x = outputs.reshape(B, C, HW).astype(dt)
    p = pan.reshape(B, 1, HW).astype(dt)

    # Tile / shard / pad selection.
    hw128 = _round_up(HW, 128)
    tile = min(MAX_TILE, hw128)
    n_tiles = _round_up(HW, tile) // tile
    # v7x megacore: guarantee a parallel grid axis of extent >= 2 when B == 1.
    n_shards = 2 if (B == 1 and n_tiles >= 2) else 1
    HW_pad = _round_up(HW, tile * n_shards)
    if HW_pad != HW:
        # Zero-padded pixels contribute 0 to every statistic used below.
        x = jnp.pad(x, ((0, 0), (0, 0), (0, HW_pad - HW)))
        p = jnp.pad(p, ((0, 0), (0, 0), (0, HW_pad - HW)))

    m = _gram(x, p, tile=tile, n_shards=n_shards)   # (S, B, C+2, C+2)
    m = jnp.sum(m, axis=0)                          # (B, C+2, C+2)

    g = m[:, :C, :C]          # (B, C, C)  X X^T
    v = m[:, :C, C]           # (B, C)     X p^T
    sx = m[:, :C, C + 1]      # (B, C)     Σ x_c
    sp = m[:, C, C + 1]       # (B,)       Σ p
    sp2 = m[:, C, C]          # (B,)       Σ p²

    # pinv(F) @ pan == (F^T F)^{-1} F^T pan for full-column-rank F; a tiny
    # relative ridge keeps the solve finite for (near-)collinear channels.
    # TODO(synk): torch.pinverse handles exact rank deficiency via SVD; the
    #             ridge approximation differs only in that degenerate case.
    tr = jnp.trace(g, axis1=-2, axis2=-1) / C
    ridge = (1e-6 * tr + 1e-30)[:, None, None] * jnp.eye(C, dtype=g.dtype)
    alpha = jnp.linalg.solve(g + ridge, v[..., None])[..., 0]   # (B, C)

    # err = p - alpha^T x, so its sums are pure functions of the Gram stats.
    n = jnp.float32(HW)
    sum_err = sp - jnp.sum(alpha * sx, axis=1)
    sum_err2 = (sp2 - 2.0 * jnp.sum(alpha * v, axis=1)
                + jnp.einsum('bc,bcd,bd->b', alpha, g, alpha))
    ss_err = sum_err2 - sum_err * sum_err / n
    ss_pan = sp2 - sp * sp / n
    # torch.var is unbiased, but the (N-1) factors cancel in the ratio.
    return 1.0 - ss_err / ss_pan                    # (B,)


# ------------------------------ pure-JAX ref ------------------------------- #
def lsr_ref(outputs, pan):
    B, C, H, W = outputs.shape
    F = outputs.reshape(B, C, H * W).transpose(0, 2, 1)   # (B, HW, C)
    P = pan.reshape(B, 1, H * W).transpose(0, 2, 1)       # (B, HW, 1)
    alpha = (jnp.linalg.pinv(F) @ P)[:, :, :, None]       # (B, C, 1, 1)
    i_r = jnp.sum(outputs * alpha, axis=1, keepdims=True)
    err = pan - i_r
    var_err = jnp.var(err.reshape(B, -1), axis=1, ddof=1)
    var_pan = jnp.var(pan.reshape(B, -1), axis=1, ddof=1)
    return 1.0 - var_err / var_pan


if __name__ == "__main__":
    def make_inputs(key, B, C, H, W):
        k1, k2, k3 = jax.random.split(key, 3)
        outputs = jax.random.normal(k1, (B, C, H, W), dtype=jnp.float32)
        # Pan correlated with outputs so the fit is meaningful.
        w = jax.random.normal(k2, (1, C, 1, 1), dtype=jnp.float32)
        noise = jax.random.normal(k3, (B, 1, H, W), dtype=jnp.float32)
        pan = jnp.sum(outputs * w, axis=1, keepdims=True) + 0.5 * noise
        return outputs, pan

    # Small canonical case (single pixel tile, batch-parallel grid).
    o1, p1 = make_inputs(jax.random.PRNGKey(0), 2, 4, 16, 16)
    cd1 = jax.block_until_ready(lsr(o1, p1))
    assert cd1.shape == (2,) and np.all(np.isfinite(np.asarray(cd1)))
    np.testing.assert_allclose(np.asarray(cd1), np.asarray(lsr_ref(o1, p1)),
                               rtol=1e-3, atol=1e-3)

    # B == 1 with HW that is neither 128-aligned nor single-tile: exercises the
    # zero-pad tail and the 2-way pixel sharding (keeps both v7x cores busy).
    o2, p2 = make_inputs(jax.random.PRNGKey(1), 1, 3, 72, 72)
    cd2 = jax.block_until_ready(lsr(o2, p2))
    assert cd2.shape == (1,) and np.all(np.isfinite(np.asarray(cd2)))
    np.testing.assert_allclose(np.asarray(cd2), np.asarray(lsr_ref(o2, p2)),
                               rtol=1e-3, atol=1e-3)

    print("KERNEL_OK")
</pallas_src>

<mosaic_0001>
module attributes {stable_mosaic.version = 11 : i64} {
  func.func @_gram_kernel(%arg0: i32, %arg1: i32, %arg2: i32, %arg3: memref<1x4x256xf32, #tpu.memory_space<vmem>>, %arg4: memref<1x1x256xf32, #tpu.memory_space<vmem>>, %arg5: memref<1x1x6x6xf32, #tpu.memory_space<vmem>>) attributes {dimension_semantics = [#tpu.dimension_semantics<parallel>, #tpu.dimension_semantics<parallel>, #tpu.dimension_semantics<arbitrary>], iteration_bounds = array<i64: 1, 2, 1>, scalar_prefetch = 0 : i64, scratch_operands = 0 : i64, tpu.core_type = #tpu.core_type<tc>, window_params = [{transform_indices = @transform_0, window_bounds = array<i64: 1, 4, 256>}, {transform_indices = @transform_1, window_bounds = array<i64: 1, 1, 256>}, {transform_indices = @transform_2, window_bounds = array<i64: 1, 1, 6, 6>}]} {
    %c0_i32 = arith.constant 0 : i32
    %0 = arith.cmpi eq, %arg2, %c0_i32 : i32
    %1 = arith.extui %0 : i1 to i32
    %c0_i32_0 = arith.constant 0 : i32
    %2 = arith.cmpi ne, %1, %c0_i32_0 : i32
    scf.if %2 {
      %cst_15 = arith.constant 0.000000e+00 : f32
      %16 = vector.broadcast %cst_15 : f32 to vector<1x1x6x6xf32>
      %c0_16 = arith.constant 0 : index
      %c0_17 = arith.constant 0 : index
      %c0_18 = arith.constant 0 : index
      %c0_19 = arith.constant 0 : index
      %17 = vector.load %arg5[%c0_16, %c0_17, %c0_18, %c0_19] : memref<1x1x6x6xf32, #tpu.memory_space<vmem>>, vector<1x1x6x6xf32>
      tpu.vector_store %arg5[%c0_16, %c0_17, %c0_18, %c0_19], %16 {strides = array<i32>} : memref<1x1x6x6xf32, #tpu.memory_space<vmem>>, vector<1x1x6x6xf32>,
    } else {
    }
    %c0 = arith.constant 0 : index
    %c0_1 = arith.constant 0 : index
    %c0_2 = arith.constant 0 : index
    %3 = vector.load %arg3[%c0, %c0_1, %c0_2] : memref<1x4x256xf32, #tpu.memory_space<vmem>>, vector<1x4x256xf32>
    %4 = vector.shape_cast %3 : vector<1x4x256xf32> to vector<4x256xf32>
    %c0_3 = arith.constant 0 : index
    %c0_4 = arith.constant 0 : index
    %c0_5 = arith.constant 0 : index
    %5 = vector.load %arg4[%c0_3, %c0_4, %c0_5] : memref<1x1x256xf32, #tpu.memory_space<vmem>>, vector<1x1x256xf32>
    %6 = vector.shape_cast %5 : vector<1x1x256xf32> to vector<1x256xf32>
    %cst = arith.constant 1.000000e+00 : f32
    %7 = vector.broadcast %cst : f32 to vector<1x256xf32>
    %8 = tpu.concatenate %4, %6, %7 in 0 : vector<4x256xf32>, vector<1x256xf32>, vector<1x256xf32> -> vector<6x256xf32>
    %c0_6 = arith.constant 0 : index
    %c0_7 = arith.constant 0 : index
    %c0_8 = arith.constant 0 : index
    %c0_9 = arith.constant 0 : index
    %9 = vector.load %arg5[%c0_6, %c0_7, %c0_8, %c0_9] : memref<1x1x6x6xf32, #tpu.memory_space<vmem>>, vector<1x1x6x6xf32>
    %10 = vector.shape_cast %9 : vector<1x1x6x6xf32> to vector<6x6xf32>
    %cst_10 = arith.constant dense<0.000000e+00> : vector<6x6xf32>
    %11 = tpu.matmul %8, %8, %cst_10 {dimension_numbers = #tpu.dot_dimension_numbers<[1], [1], [0], [0], [0, 0, 1, 0], [], []>} : vector<6x256xf32>, vector<6x256xf32>, vector<6x6xf32> -> vector<6x6xf32>
    %12 = arith.addf %10, %11 : vector<6x6xf32>
    %c0_11 = arith.constant 0 : index
    %c0_12 = arith.constant 0 : index
    %c0_13 = arith.constant 0 : index
    %c0_14 = arith.constant 0 : index
    %13 = vector.load %arg5[%c0_11, %c0_12, %c0_13, %c0_14] : memref<1x1x6x6xf32, #tpu.memory_space<vmem>>, vector<1x1x6x6xf32>
    %14 = vector.shape_cast %13 : vector<1x1x6x6xf32> to vector<6x6xf32>
    %15 = vector.shape_cast %12 : vector<6x6xf32> to vector<1x1x6x6xf32>
    tpu.vector_store %arg5[%c0_11, %c0_12, %c0_13, %c0_14], %15 {strides = array<i32>} : memref<1x1x6x6xf32, #tpu.memory_space<vmem>>, vector<1x1x6x6xf32>,
    return
  }
  func.func @transform_0(%arg0: i32, %arg1: i32, %arg2: i32) -> (i32, i32, i32) {
    %c1_i32 = arith.constant 1 : i32
    %0 = arith.muli %arg0, %c1_i32 : i32
    %1 = arith.addi %0, %arg2 : i32
    %c0_i32 = arith.constant 0 : i32
    %c0_i32_0 = arith.constant 0 : i32
    return %arg1, %c0_i32, %1 : i32, i32, i32
  }
  func.func @transform_1(%arg0: i32, %arg1: i32, %arg2: i32) -> (i32, i32, i32) {
    %c1_i32 = arith.constant 1 : i32
    %0 = arith.muli %arg0, %c1_i32 : i32
    %1 = arith.addi %0, %arg2 : i32
    %c0_i32 = arith.constant 0 : i32
    %c0_i32_0 = arith.constant 0 : i32
    return %arg1, %c0_i32, %1 : i32, i32, i32
  }
  func.func @transform_2(%arg0: i32, %arg1: i32, %arg2: i32) -> (i32, i32, i32, i32) {
    %c0_i32 = arith.constant 0 : i32
    %c0_i32_0 = arith.constant 0 : i32
    %c0_i32_1 = arith.constant 0 : i32
    return %arg0, %arg1, %c0_i32, %c0_i32_0 : i32, i32, i32, i32
  }
}

</mosaic_0001>

<bundles_post_ra>
// kernel: tpu_custom_call.1
= control target key start
LH: loop header
LB: loop body
LE: loop exit
PB: predicated region body
PF: predicated region fallthrough
CT: control target
= control target key end

     0   :  { %7 = vsyncpa [#allocation3], 0  ;;  %s852_s0 = inlined_call_operand.hbm [shape: f32[2,4,256], index: 0, kind: input, shape index: {}]   ;;  %s853_s1 = inlined_call_operand.hbm [shape: f32[2,1,256], index: 1, kind: input, shape index: {}]   ;;  %s854_s2 = inlined_call_operand.vmem [shape: f32[1,2,6,6], index: 2, kind: output, shape index: {}]  }
   0x1   :  { %9 = vsyncpa [#allocation3 + $0x1], 0 }
   0x2   :  { %10 = vsyncpa [#allocation5], 0 }
   0x3   :  { %12 = vsyncpa [#allocation5 + $0x1], 0  ;;  %s684_s9 = smov 0   ;;  %s686_s10 = smov 0  }
   0x4   :  { %s688_s11 = smov 0   ;;  %s690_s12 = smov 0  }
   0x5   :  { %s692_s13 = smov 0   ;;  %s694_s14 = smov 0  }
   0x6 LB: > { %s470_s15 = sadd.s32 4294967295, %s664_s14   ;;  %s33_s16 = sadd.s32 1, %s660_s13  ;;  %s664_s14 = sphi %s694_s14, %s18_s14   ;;  %s660_s13 = sphi %s692_s13, %s868_s13   ;;  %s656_s12 = sphi %s690_s12, %s867_s12   ;;  %s652_s11 = sphi %s688_s11, %s866_s11   ;;  %s648_s10 = sphi %s686_s10, %s865_s10   ;;  %s644_s9 = sphi %s684_s9, %s864_s9  }
   0x7   : > { %p35_p0 = scmp.ge.s32.totalorder %s33_s16, 2  ;;  %s48_s17 = sadd.s32 1, %s652_s11 }
   0x8   : > { %p55_p1 = scmp.ne.s32.totalorder %s652_s11, %s648_s10  ;;  %p56_p2 = scmp.eq.s32.totalorder %s664_s14, 0 }
   0x9   : > { %s870_s16 = smov (%p35_p0, %s33_s16), 0  ;;  %p61_p4 = scmp.ne.s32.totalorder %s648_s10, %s644_s9 }
   0xa   : > { %p720_p3 = por %p56_p2, %p55_p1  ;;  %s43_s19 = ssub.s32 %s660_s13, %s870_s16 }
   0xb   : > { %p62_p5 = scmp.eq.s32.totalorder %s470_s15, 0  ;;  %p46_p6 = scmp.eq.s32.totalorder %s43_s19, 0 }
   0xc   : > { %p499_p8 = scmp.lt.s32.totalorder %s664_s14, 2  ;;  %s736_s22 = sand.u32 1, %s652_s11  }
   0xd   : > { %p727_p7 = por %p62_p5, %p61_p4  ;;  %s486_s23 = sshll.u32 %s660_s13, 7 }
   0xe   : > { %s733_s21 = scalar_select %p46_p6, %s652_s11, %s48_s17  }
   0xf   : > { %s857_s20 = scalar_select %p727_p7, 1, 0 }
  0x10   : > { %s474_s24 = sshll.u32 %s736_s22, 3  ;;  %s743_s27 = scalar_lea.hbm %s852_s0, %s486_s23 }
  0x11   : > { %s147_s28 = scalar_lea.vmem [#allocation2], %s474_s24  ;;  %p747_p9 = pnand %p499_p8, %p720_p3 }
  0x12   : > { %s158_s29 = sshll.u32 %s147_s28, 4  ;;  %s144_s3 = scalar_lea.sflag [#allocation3], %s736_s22  ;;  %s751_s29 = int_to_ptr.vmem [resolvable:$true] %s158_s29 }
  0x13   : > { %s550_s4 = scalar_lea.hbm %s743_s27, 128  ;;  %p552_p13 = pneg %p747_p9 }
  0x14   : > { %p551_p12 = scmp.ne.s32.totalorder %s743_s27, %s550_s4  ;;  %s555_s7 = scalar_lea.hbm %s852_s0, 256 }
  0x15   : > { %p556_p2 = scmp.lt.u32.totalorder %s743_s27, %s852_s0  ;;  %p557_p3 = scmp.lt.u32.totalorder %s555_s7, %s550_s4 }
  0x16   : > { %p553_p0 = pnand %p552_p13, %p551_p12  ;;  %p559_p5 = scmp.lt.u32.totalorder %s550_s4, %s743_s27 }
  0x17   : > { %p558_p4 = por %p557_p3, %p556_p2 }
  0x18   : > { %p554_p1 = pneg %p553_p0 }
  0x19   : > { %p560_p6 = por %p559_p5, %p558_p4 }
  0x1b   : > { %p561_p8 = pnand %p560_p6, %p554_p1 }
  0x1d   : > { %564 = shalt.err (!%p561_p8)
}
  0x1e   : > { %s565_s15 = scalar_lea.vmem %s751_s29, 128  ;;  %s666_s17 = smov [#allocation2]  }
  0x1f   : > { %p566_p12 = scmp.ne.s32.totalorder %s751_s29, %s565_s15  ;;  %s570_s18 = sshll.u32 %s666_s17, 4  ;;  %s571_s18 = int_to_ptr.vmem [resolvable:$false] %s570_s18 }
  0x20   : > { %s572_s19 = scalar_lea.vmem %s571_s18, 256  ;;  %p573_p11 = scmp.lt.s32.totalorder %s751_s29, %s571_s18 }
  0x21   : > { %p568_p0 = pnand %p566_p12, %p552_p13  ;;  %p574_p2 = scmp.lt.s32.totalorder %s572_s19, %s565_s15 }
  0x23   : > { %p569_p10 = pneg %p568_p0  ;;  %p575_p3 = por %p574_p2, %p573_p11 }
  0x25   : > { %p576_p4 = pnand %p575_p3, %p569_p10 }
  0x27   : > { %579 = shalt.err (!%p576_p4)
}
  0x28   : > { %495 = dma.hbm_to_vmem [thread:$0]  (!%p747_p9), %s743_s27, 128, %s751_s29, %s144_s3  }
  0x29   : > { %p859_p1 = scmp.lt.s32.totalorder %s664_s14, 3  ;;  %p860_p5 = scmp.ge.s32.totalorder %s664_s14, 1 }
  0x2a   : > { %s477_s24 = sshll.u32 %s736_s22, 1  ;;  %s487_s25 = sshll.u32 %s660_s13, 5 }
  0x2b   : > { %p785_p6 = pnand %p860_p5, %p859_p1  ;;  %s794_s4 = scalar_lea.hbm %s853_s1, %s487_s25 }
  0x2c   : > { %s169_s5 = scalar_lea.vmem [#allocation4], %s477_s24  ;;  %s166_s27 = scalar_lea.sflag [#allocation5], %s736_s22 }
  0x2d   : > { %s861_s23 = scalar_select %p785_p6, 1, 0 }
  0x2e   : > { %s180_s6 = sshll.u32 %s169_s5, 4  ;;  %s580_s29 = scalar_lea.hbm %s794_s4, 32  ;;  %s181_s6 = int_to_ptr.vmem [resolvable:$true] %s180_s6 }
  0x2f   : > { %p581_p10 = scmp.ne.s32.totalorder %s794_s4, %s580_s29  ;;  %s585_s8 = scalar_lea.hbm %s853_s1, 64 }
  0x30   : > { %p586_p12 = scmp.lt.u32.totalorder %s794_s4, %s853_s1  ;;  %p587_p0 = scmp.lt.u32.totalorder %s585_s8, %s580_s29 }
  0x31   : > { %p583_p11 = pnand %p581_p10, %p552_p13  ;;  %p589_p3 = scmp.lt.u32.totalorder %s580_s29, %s794_s4 }
  0x32   : > { %p588_p2 = por %p587_p0, %p586_p12 }
  0x33   : > { %p584_p8 = pneg %p583_p11 }
  0x34   : > { %p590_p4 = por %p589_p3, %p588_p2 }
  0x36   : > { %p591_p1 = pnand %p590_p4, %p584_p8 }
  0x38   : > { %594 = shalt.err (!%p591_p1)
}
  0x39   : > { %s595_s22 = scalar_lea.vmem %s181_s6, 32  ;;  %s667_s17 = smov [#allocation4]  }
  0x3a   : > { %p596_p5 = scmp.ne.s32.totalorder %s181_s6, %s595_s22  ;;  %s600_s18 = sshll.u32 %s667_s17, 4  ;;  %s601_s18 = int_to_ptr.vmem [resolvable:$false] %s600_s18 }
  0x3b   : > { %s602_s19 = scalar_lea.vmem %s601_s18, 64  ;;  %p603_p7 = scmp.lt.s32.totalorder %s181_s6, %s601_s18 }
  0x3c   : > { %p598_p10 = pnand %p596_p5, %p552_p13  ;;  %p604_p6 = scmp.lt.s32.totalorder %s602_s19, %s595_s22 }
  0x3e   : > { %p599_p11 = pneg %p598_p10  ;;  %p605_p0 = por %p604_p6, %p603_p7 }
  0x40   : > { %p606_p12 = pnand %p605_p0, %p599_p11 }
  0x42   : > { %609 = shalt.err (!%p606_p12)
}
  0x43   : > { %498 = dma.hbm_to_vmem [thread:$0]  (!%p747_p9), %s794_s4, 32, %s181_s6, %s166_s27  }
  0x44   : > { %p862_p8 = scmp.ne.s32.totalorder %s861_s23, 0 }
  0x45   : > { %s191_s24 = sand.u32 (!%p862_p8), 1, %s648_s10   ;;  %p863_p13 = scmp.ne.s32.totalorder (!%p862_p8), %s857_s20, 0 }
  0x46   : > { %189 = sbr.rel (%p862_p8) target bundleno = 310 (0x136), region = 28  ;;  %s481_s25 = sshll.u32 (!%p862_p8), %s191_s24, 3 }
  0x47   : > { %s192_s26 = scalar_lea.sflag (!%p862_p8), [#allocation3], %s191_s24  ;;  %s195_s28 = scalar_lea.vmem (!%p862_p8), [#allocation2], %s481_s25 }
  0x4d   : > { %635 = dma.done.wait (%p863_p13), %s192_s26, 128  }
  0x4e   : > { %637 = vsyncadd (%p863_p13), %s192_s26, 4294967168  ;;  %s482_s5 = sshll.u32 %s191_s24, 1  ;;  %s201_s29 = scalar_lea.sflag [#allocation5], %s191_s24 }
  0x4f   : > { %s204_s30 = scalar_lea.vmem [#allocation4], %s482_s5 }
  0x50   : > { %639 = dma.done.wait (%p863_p13), %s201_s29, 32  }
  0x51   : > { %641 = vsyncadd (%p863_p13), %s201_s29, 4294967264  ;;  %v257_v0 = vlaneseq  ;;  %p239_p7 = scmp.lt.s32.totalorder %s656_s12, 1  ;;  %vm249_vm0 = vcmask 46080   ;;  %v668_v4 = vmov 0.0   ;;  %v251_v5 = vld [vmem:[%s195_s28] sm:$0xff]  ;;  %vm267_vm1 = vcmask 1043456  }
  0x52   : > { %v252_v6 = vld [vmem:[%s204_s30] sm:$0x3]  ;;  %v254_v7 = vcombine.high %v251_v5, %v251_v5  ;;  %vm270_vm2 = vcmask 1044480  }
  0x53   : > { %v258_v1 = vshrl.u32 %v257_v0, 7  ;;  %s872_s12 = smov (!%p239_p7, %s656_s12), 1 }
  0x54   : > { %s483_s23 = sshll.u32 %s872_s12, 3 }
  0x55   : > { %v263_v2 = vsub.s32 1, %v258_v1  ;;  %v259_v3 = vsub.s32 0, %v258_v1  ;;  %s244_s27 = scalar_lea.vmem %s854_s2, %s483_s23 }
  0x56   : > { %250 = vst.msk [vmem:[%s244_s27] sm:$0x3f] %vm249_vm0, %v668_v4 }
  0x57   : > { %v264_v8 = vrot.slane %v252_v6, %v263_v2  ;;  %v260_v9 = vrot.slane %v252_v6, %v259_v3 }
  0x59   : > { %v269_v10 = vsel %vm267_vm1, %v254_v7, %v264_v8  ;;  %v268_v11 = vsel %vm267_vm1, %v251_v5, %v260_v9 }
  0x5a   : > { %v272_v12 = vsel %vm270_vm2, %v269_v10, 1.0  ;;  %v271_v13 = vsel %vm270_vm2, %v268_v11, 1.0 }
  0x5b   : > { %274 = vmatprep.subr.mxu0 %v272_v12  ;;  %338 = vmatprep.mubr.f32.mxu0 %v272_v12 }
  0x5c   : > { %275 = vmatpush1.xpose.msra.mxu0 %v271_v13 }
  0x5d   : > { %v273_v14 = vld [vmem:[%s244_s27] sm:$0x3f] }
  0x5f   : > { %339 = vmatmul.mubr.f32.vlgmr.msra.gmra.mrb[0].mxu0 %v271_v13 }
 0x132   : > { %v340_v15 = vpop.f32.mrb[0].mxu0 }
 0x133   : > { %v344_v16 = vadd.f32 %v340_v15, %v273_v14  ;;  %v342_v17 = vpop.f32.mrb[1].mxu0 }
 0x135   : > { %346 = vst.msk [vmem:[%s244_s27] sm:$0x3f] %vm249_vm0, %v344_v16 }
 0x136 PF: > { %s18_s14 = sadd.s32 1, %s664_s14   ;;  %s864_s9 = smov %s648_s10 }
 0x137   : > { %p15_p9 = scmp.ge.s32.totalorder %s18_s14, 4   ;;  %s865_s10 = smov %s652_s11 }
 0x138   : > { %s866_s11 = smov %s733_s21  ;;  %s867_s12 = smov %s660_s13 }
 0x139   : > { %s868_s13 = smov %s870_s16  ;;  %17 = sbr.rel (!%p15_p9) target bundleno = 6 (0x6), region = 85 }
 0x140   :  { %374 = vsyncpa [#allocation3], 1 }
 0x141   :  { %376 = vsyncpa [#allocation3 + $0x1], 1 }
 0x142   :  { %377 = vsyncpa [#allocation5], 1 }
 0x143   :  { %379 = vsyncpa [#allocation5 + $0x1], 1 }

</bundles_post_ra>
